<compile_context>
chip_gen: v7x
topology: tpu7x:2x2x1
jax: 0.10.0
libtpu: 0.0.40
codegen_flags: <defaults>
</compile_context>

<pallas_src>
import functools

import jax
import jax.numpy as jnp
from jax.experimental import pallas as pl
from jax.experimental.pallas import tpu as pltpu

LANE = 128


def _round_up(n, m):
    return ((n + m - 1) // m) * m


def _decoder3_kernel(x_ref, wf_ref, bf_ref, o_ref):
    # Single MXU pass on the folded bf16 weight, f32 accumulation,
    # bias add on the VPU and sigmoid on the EUP, all in f32.
    x = x_ref[...].astype(jnp.bfloat16)
    z = jnp.dot(x, wf_ref[...], preferred_element_type=jnp.float32)
    z = z + bf_ref[...]
    o_ref[...] = jax.nn.sigmoid(z).astype(o_ref.dtype)


def fold_decoder3_params(w1, b1, w2, b2):
    """Fold the two bias-only Linear layers (no activation between them).

    Returns (wf, bf) with the output dim zero-padded to a multiple of 128 so
    kernel stores are lane-dense; wf is stored as bf16, bf stays f32.
    """
    wf = jnp.dot(w1, w2, preferred_element_type=jnp.float32)       # (latent, out)
    bf = jnp.dot(b1, w2, preferred_element_type=jnp.float32) + b2  # (1, out)
    out_size = wf.shape[1]
    n_pad = _round_up(out_size, LANE) - out_size
    wf = jnp.pad(wf, ((0, 0), (0, n_pad))).astype(jnp.bfloat16)
    bf = jnp.pad(bf, ((0, 0), (0, n_pad))).astype(jnp.float32)
    return wf, bf


@functools.partial(jax.jit, static_argnames=("out_size",))
def decoder3_forward(x, wf, bf, *, out_size):
    B, K = x.shape
    Np = wf.shape[1]  # padded output width (multiple of 128)

    # Batch tile: a single step for small B; caps at 256 rows so large batches
    # pipeline x/out tiles behind compute and shard across TensorCores.
    TM = min(_round_up(B, 8), 256)
    Bp = _round_up(B, TM)
    if Bp != B:
        x = jnp.pad(x, ((0, Bp - B), (0, 0)))

    out = pl.pallas_call(
        _decoder3_kernel,
        out_shape=jax.ShapeDtypeStruct((Bp, Np), jnp.float32),
        grid_spec=pltpu.PrefetchScalarGridSpec(
            num_scalar_prefetch=0,
            grid=(Bp // TM,),
            in_specs=[
                pl.BlockSpec((TM, K), lambda i: (i, 0)),   # x tile (pipelined)
                pl.BlockSpec((K, Np), lambda i: (0, 0)),   # folded weight (resident)
                pl.BlockSpec((1, Np), lambda i: (0, 0)),   # folded bias   (resident)
            ],
            out_specs=pl.BlockSpec((TM, Np), lambda i: (i, 0)),
        ),
        compiler_params=pltpu.CompilerParams(
            dimension_semantics=("parallel",)),
        cost_estimate=pl.CostEstimate(
            flops=2 * Bp * K * Np,
            transcendentals=Bp * Np,
            bytes_accessed=Bp * K * 4 + K * Np * 2 + Np * 4 + Bp * Np * 4,
        ),
    )(x, wf, bf)
    return out[:B, :out_size]


def init_params(key, latent_size=16, hidden_size=128, output_size=28 * 28):
    """Deterministic init mimicking nn.Linear (uniform +-1/sqrt(fan_in)).
    Weights stored as (in, out) so the math is x @ W (transposed vs PyTorch)."""
    k1, k2, k3, k4 = jax.random.split(key, 4)
    bound1 = 1.0 / jnp.sqrt(latent_size)
    bound2 = 1.0 / jnp.sqrt(hidden_size)
    w1 = jax.random.uniform(k1, (latent_size, hidden_size), jnp.float32,
                            -bound1, bound1)
    b1 = jax.random.uniform(k2, (1, hidden_size), jnp.float32, -bound1, bound1)
    w2 = jax.random.uniform(k3, (hidden_size, output_size), jnp.float32,
                            -bound2, bound2)
    b2 = jax.random.uniform(k4, (1, output_size), jnp.float32, -bound2, bound2)
    return w1, b1, w2, b2


if __name__ == "__main__":
    latent_size, hidden_size, output_size = 16, 128, 28 * 28
    batch = 8

    key = jax.random.PRNGKey(0)
    key_x, key_p = jax.random.split(key)
    x = jax.random.normal(key_x, (batch, latent_size), jnp.float32)
    w1, b1, w2, b2 = init_params(key_p, latent_size, hidden_size, output_size)

    # Fold the two linear layers once, outside the hot path.
    wf, bf = fold_decoder3_params(w1, b1, w2, b2)
    wf, bf = jax.block_until_ready((wf, bf))

    out = decoder3_forward(x, wf, bf, out_size=output_size)
    out = jax.block_until_ready(out)
    assert out.shape == (batch, output_size)

    # 1) Exact-path check: plain-JAX math on the same folded bf16 params.
    z_ref = jnp.dot(x.astype(jnp.bfloat16), wf,
                    preferred_element_type=jnp.float32) + bf
    ref_exact = jax.nn.sigmoid(z_ref)[:, :output_size]
    assert jnp.allclose(out, ref_exact, atol=2e-3, rtol=0), "exact-path mismatch"

    # 2) Semantic check against the original two-layer f32 module math
    #    (tolerance accounts for bf16 weight storage).
    ref_module = jax.nn.sigmoid((x @ w1 + b1) @ w2 + b2)
    assert jnp.allclose(out, ref_module, atol=2e-2, rtol=0), "module-semantics mismatch"

    print("KERNEL_OK")
</pallas_src>

<mosaic_0001>
module attributes {stable_mosaic.version = 11 : i64} {
  func.func @_decoder3_kernel(%arg0: i32, %arg1: memref<8x16xf32, #tpu.memory_space<vmem>>, %arg2: memref<16x896xbf16, #tpu.memory_space<vmem>>, %arg3: memref<1x896xf32, #tpu.memory_space<vmem>>, %arg4: memref<8x896xf32, #tpu.memory_space<vmem>>) attributes {dimension_semantics = [#tpu.dimension_semantics<parallel>], iteration_bounds = array<i64: 1>, scalar_prefetch = 0 : i64, scratch_operands = 0 : i64, tpu.core_type = #tpu.core_type<tc>, window_params = [{transform_indices = @transform_0, window_bounds = array<i64: 8, 16>}, {pipeline_mode = #tpu.pipeline_mode<synchronous>, transform_indices = @transform_1, window_bounds = array<i64: 16, 896>}, {pipeline_mode = #tpu.pipeline_mode<synchronous>, transform_indices = @transform_2, window_bounds = array<i64: 1, 896>}, {transform_indices = @transform_3, window_bounds = array<i64: 8, 896>}]} {
    %c0 = arith.constant 0 : index
    %c0_0 = arith.constant 0 : index
    %0 = vector.load %arg1[%c0, %c0_0] : memref<8x16xf32, #tpu.memory_space<vmem>>, vector<8x16xf32>
    %1 = arith.truncf %0 : vector<8x16xf32> to vector<8x16xbf16>
    %c0_1 = arith.constant 0 : index
    %c0_2 = arith.constant 0 : index
    %2 = vector.load %arg2[%c0_1, %c0_2] : memref<16x896xbf16, #tpu.memory_space<vmem>>, vector<16x896xbf16>
    %cst = arith.constant dense<0.000000e+00> : vector<8x896xf32>
    %3 = tpu.matmul %1, %2, %cst {dimension_numbers = #tpu.dot_dimension_numbers<[1], [0], [0], [1], [0, 0, 1, 1], [], []>} : vector<8x16xbf16>, vector<16x896xbf16>, vector<8x896xf32> -> vector<8x896xf32>
    %c0_3 = arith.constant 0 : index
    %c0_4 = arith.constant 0 : index
    %4 = vector.load %arg3[%c0_3, %c0_4] : memref<1x896xf32, #tpu.memory_space<vmem>>, vector<1x896xf32>
    %5 = vector.broadcast %4 : vector<1x896xf32> to vector<8x896xf32>
    %6 = arith.addf %3, %5 : vector<8x896xf32>
    %7 = arith.negf %6 : vector<8x896xf32>
    %8 = math.exp %7 : vector<8x896xf32>
    %cst_5 = arith.constant 1.000000e+00 : f32
    %9 = vector.broadcast %cst_5 : f32 to vector<8x896xf32>
    %10 = arith.addf %9, %8 : vector<8x896xf32>
    %11 = arith.divf %9, %10 : vector<8x896xf32>
    %c0_6 = arith.constant 0 : index
    %c0_7 = arith.constant 0 : index
    %12 = vector.load %arg4[%c0_6, %c0_7] : memref<8x896xf32, #tpu.memory_space<vmem>>, vector<8x896xf32>
    tpu.vector_store %arg4[%c0_6, %c0_7], %11 {strides = array<i32>} : memref<8x896xf32, #tpu.memory_space<vmem>>, vector<8x896xf32>,
    return
  }
  func.func @transform_0(%arg0: i32) -> (i32, i32) {
    %c0_i32 = arith.constant 0 : i32
    %c0_i32_0 = arith.constant 0 : i32
    return %arg0, %c0_i32 : i32, i32
  }
  func.func @transform_1(%arg0: i32) -> (i32, i32) {
    %c0_i32 = arith.constant 0 : i32
    %c0_i32_0 = arith.constant 0 : i32
    %c0_i32_1 = arith.constant 0 : i32
    return %c0_i32, %c0_i32_0 : i32, i32
  }
  func.func @transform_2(%arg0: i32) -> (i32, i32) {
    %c0_i32 = arith.constant 0 : i32
    %c0_i32_0 = arith.constant 0 : i32
    %c0_i32_1 = arith.constant 0 : i32
    return %c0_i32, %c0_i32_0 : i32, i32
  }
  func.func @transform_3(%arg0: i32) -> (i32, i32) {
    %c0_i32 = arith.constant 0 : i32
    %c0_i32_0 = arith.constant 0 : i32
    return %arg0, %c0_i32 : i32, i32
  }
}

</mosaic_0001>

<bundles_post_ra>
// kernel: decoder3_forward.1
= control target key start
LH: loop header
LB: loop body
LE: loop exit
PB: predicated region body
PF: predicated region fallthrough
CT: control target
= control target key end

     0   :  { %8 = vsyncpa [#allocation3], 0  ;;  %s579_s0 = inlined_call_operand.hbm [shape: f32[8,16], index: 0, kind: input, shape index: {}]   ;;  %s580_s1 = inlined_call_operand.hbm [shape: bf16[16,896], index: 1, kind: input, shape index: {}]   ;;  %s581_s2 = inlined_call_operand.vmem [shape: f32[1,896], index: 2, kind: input, shape index: {}]   ;;  %s582_s3 = inlined_call_operand.hbm [shape: f32[8,896], index: 3, kind: output, shape index: {}]  }
   0x1   :  { %9 = vsyncpa [#allocation6], 0 }
   0x2   :  { %10 = vsyncpa [#allocation4], 0  ;;  %s501_s12 = smov [#allocation2]   ;;  %s502_s14 = smov [#allocation5]  }
   0x3   :  { %s17_s13 = sshll.u32 %s501_s12, 4  ;;  %s26_s15 = sshll.u32 %s502_s14, 4  ;;  %s18_s13 = int_to_ptr.vmem [resolvable:$true] %s17_s13  ;;  %s529_s15 = int_to_ptr.vmem [resolvable:$true] %s26_s15 }
   0x4   :  { %s429_s18 = scalar_lea.hbm %s579_s0, 128 }
   0x5   :  { %p430_p0 = scmp.ne.s32.totalorder %s579_s0, %s429_s18  ;;  %p433_p1 = scmp.lt.u32.totalorder %s429_s18, %s579_s0 }
   0x7   :  { %p435_p2 = pnand %p433_p1, %p430_p0 }
   0x9   :  { %438 = shalt.err (!%p435_p2)
}
   0xa   :  { %s439_s23 = scalar_lea.vmem %s18_s13, 128  ;;  %p444_p4 = scmp.lt.s32.totalorder %s18_s13, %s18_s13 }
   0xb   :  { %p440_p3 = scmp.ne.s32.totalorder %s18_s13, %s439_s23  ;;  %p445_p5 = scmp.lt.s32.totalorder %s439_s23, %s439_s23 }
   0xd   :  { %p446_p6 = por %p445_p5, %p444_p4 }
   0xf   :  { %p447_p7 = pnand %p446_p6, %p440_p3 }
  0x11   :  { %450 = shalt.err (!%p447_p7)
}
  0x12   :  { %20 = dma.hbm_to_vmem [thread:$0]  %s579_s0, 128, %s18_s13, [#allocation3]  }
  0x13   :  { %s451_s28 = scalar_lea.hbm %s580_s1, 896 }
  0x14   :  { %p452_p8 = scmp.ne.s32.totalorder %s580_s1, %s451_s28  ;;  %p455_p9 = scmp.lt.u32.totalorder %s451_s28, %s580_s1 }
  0x16   :  { %p457_p10 = pnand %p455_p9, %p452_p8 }
  0x18   :  { %460 = shalt.err (!%p457_p10)
}
  0x19   :  { %s461_s6 = scalar_lea.vmem %s529_s15, 896  ;;  %p466_p12 = scmp.lt.s32.totalorder %s529_s15, %s529_s15 }
  0x1a   :  { %p462_p11 = scmp.ne.s32.totalorder %s529_s15, %s461_s6  ;;  %p467_p13 = scmp.lt.s32.totalorder %s461_s6, %s461_s6 }
  0x1c   :  { %p468_p0 = por %p467_p13, %p466_p12 }
  0x1e   :  { %p469_p1 = pnand %p468_p0, %p462_p11 }
  0x20   :  { %472 = shalt.err (!%p469_p1)
}
  0x21   :  { %s503_s0 = smov 448   ;;  %s504_s7 = smov 28  }
  0x22   :  { %32 = dma.hbm_to_vmem [thread:$0]  %s580_s1, 896, %s529_s15, [#allocation6], %s503_s0, %s503_s0, %s504_s7  }
  0x23   :  { %495 = dma.done.wait [#allocation3], 128  }
  0x24   :  { %496 = vsyncadd [#allocation3], 4294967168 }
  0x25   :  { %497 = dma.done.wait [#allocation6], 896  }
  0x26   :  { %498 = vsyncadd [#allocation6], 4294966400  ;;  %v505_v0 = vmov 0   ;;  %v391_v1 = vld [vmem:[#allocation5 + $0x4] ss:$28 sps:$4 sm:$0xff]   ;;  %v42_v5 = vld [vmem:[#allocation2] sm:$0xff]  ;;  %v54_v11 = vlaneseq }
  0x27   :  { %161 = vmatprep.mubr.bf16.mxu0 %v505_v0  ;;  %202 = vmatprep.mubr.bf16.mxu1 %v505_v0  ;;  %v393_v2 = vld [vmem:[#allocation5 + $0xc] ss:$28 sps:$4 sm:$0xff]   ;;  %v395_v3 = vld [vmem:[#allocation5] ss:$28 sps:$4 sm:$0xff]   ;;  %v43_v6 = vpack.c.bf16 %v42_v5, %v42_v5  ;;  %vm125_vm0 = vcmask 130048   ;;  %v506_v9 = vmov 0.0  }
  0x28   :  { %129 = vmatprep.subr.bf16.mxu0 %v391_v1  ;;  %v396_v4 = vld [vmem:[#allocation5 + $0x8] ss:$28 sps:$4 sm:$0xff]   ;;  %170 = vmatprep.subr.bf16.mxu1 %v393_v2  ;;  %v397_v7 = vld [vmem:[#allocation5 + $0x10] ss:$28 sps:$4 sm:$0xff]   ;;  %v400_v10 = vld [vmem:[#allocation5 + $0x18] ss:$28 sps:$4 sm:$0xff]  }
  0x29   :  { %130 = vmatpush1.bf16.msra.mxu0 %v395_v3  ;;  %171 = vmatpush1.bf16.msra.mxu1 %v396_v4  ;;  %v399_v8 = vld [vmem:[#allocation5 + $0x14] ss:$28 sps:$4 sm:$0xff]   ;;  %vm507_vm1 = vmmov 0   ;;  %v55_v12 = vshrl.u32 %v54_v11, 7  ;;  %v52_v15 = vld [vmem:[%s581_s2] sm:$0xff]  ;;  %s508_s2 = smov [#allocation7]  }
  0x2a   :  { %377 = vmatprep.subr.bf16.mxu1 %v506_v9  ;;  %211 = vmatprep.subr.bf16.mxu0 %v399_v8  ;;  %s347_s11 = sshll.u32 %s508_s2, 4  ;;  %s348_s11 = int_to_ptr.vmem [resolvable:$true] %s347_s11 }
  0x2b   :  { %v56_v13 = vsub.s32 0, %v55_v12  ;;  %v64_v14 = vsub.s32 2, %v55_v12  ;;  %v60_v16 = vsub.s32 1, %v55_v12  ;;  %v68_v17 = vsub.s32 3, %v55_v12  ;;  %s473_s12 = scalar_lea.vmem %s348_s11, 896  ;;  %p478_p3 = scmp.lt.s32.totalorder %s348_s11, %s348_s11 }
  0x2c   :  { %364 = vmatmul.mubr.msk.bf16.vlgmr.msra.gmra.mrb[0].mxu0 %vm125_vm0, %v43_v6  ;;  %365 = vmatmul.mubr.msk.bf16.vlgmr.msra.gmra.mrb[0].mxu1 %vm125_vm0, %v43_v6  ;;  %v72_v28 = vsub.s32 4, %v55_v12  ;;  %v80_v29 = vsub.s32 6, %v55_v12  ;;  %v76_v34 = vsub.s32 5, %v55_v12  ;;  %p474_p2 = scmp.ne.s32.totalorder %s348_s11, %s473_s12  ;;  %p479_p4 = scmp.lt.s32.totalorder %s473_s12, %s473_s12 }
  0x2d   :  { %212 = vmatpush1.bf16.msra.mxu0 %v397_v7  ;;  %378 = vmatpush3.bf16.msra.mxu1 %v400_v10  ;;  %v57_v18 = vrot.slane %v52_v15, %v56_v13  ;;  %v65_v19 = vrot.slane %v52_v15, %v64_v14  ;;  %v61_v20 = vrot.slane %v52_v15, %v60_v16 }
  0x2e   :  { %243 = vmatprep.mubr.bf16.mxu0 %v505_v0  ;;  %379 = vmatprep.mubr.msk.bf16.mxu1 %vm507_vm1, %v506_v9  ;;  %v69_v21 = vrot.slane %v52_v15, %v68_v17  ;;  %v73_v41 = vrot.slane %v52_v15, %v72_v28  ;;  %v81_v42 = vrot.slane %v52_v15, %v80_v29  ;;  %p480_p5 = por %p479_p4, %p478_p3 }
  0x2f   :  { %v77_v43 = vrot.slane %v52_v15, %v76_v34 }
  0x30   :  { %p481_p6 = pnand %p480_p5, %p474_p2 }
  0x34   :  { %366 = vmatmul.mubr.msk.bf16.vlgmr.msra.gmra.mrb[4].mxu0 %vm125_vm0, %v43_v6  ;;  %380 = vmatmul.mubr.msk.bf16.vlgmr.msra.gmra.mrb[4].mxu1 %vm125_vm0, %v43_v6 }
  0xff   :  { %v163_v22 = vpop.f32.mrb[0].mxu0  ;;  %v204_v23 = vpop.f32.mrb[0].mxu1 }
 0x100   :  { %v164_v24 = vadd.f32 %v163_v22, %v57_v18  ;;  %v205_v25 = vadd.f32 %v204_v23, %v65_v19  ;;  %v165_v26 = vpop.f32.mrb[1].mxu0  ;;  %v206_v27 = vpop.f32.mrb[1].mxu1 }
 0x101   :  { %v166_v30 = vadd.f32 %v165_v26, %v61_v20  ;;  %v207_v31 = vadd.f32 %v206_v27, %v69_v21  ;;  %v167_v32 = vpop.f32.mrb[2].mxu0  ;;  %v208_v33 = vpop.f32.mrb[2].mxu1 }
 0x102   :  { %v368_v35 = vmul.f32 -1.442695, %v164_v24  ;;  %v370_v36 = vmul.f32 -1.442695, %v205_v25  ;;  %v168_v37 = vpop.f32.mrb[3].mxu0  ;;  %v209_v38 = vpop.f32.mrb[3].mxu1 }
 0x103   :  { %v369_v39 = vmul.f32 -1.442695, %v166_v30  ;;  %v371_v40 = vmul.f32 -1.442695, %v207_v31 }
 0x104   :  { %401 = vpow2.f32 %v368_v35 }
 0x105   :  { %403 = vpow2.f32 %v370_v36 }
 0x106   :  { %405 = vpow2.f32 %v369_v39 }
 0x107   :  { %407 = vpow2.f32 %v371_v40  ;;  %v245_v44 = vpop.f32.mrb[4].mxu0  ;;  %v286_v45 = vpop.f32.mrb[4].mxu1 }
 0x108   :  { %v246_v46 = vadd.f32 %v245_v44, %v73_v41  ;;  %v287_v47 = vadd.f32 %v286_v45, %v81_v42  ;;  %v247_v48 = vpop.f32.mrb[5].mxu0  ;;  %v381_v49 = vpop.f32.mrb[5].mxu1 }
 0x109   :  { %v248_v50 = vadd.f32 %v247_v48, %v77_v43  ;;  %v249_v51 = vpop.f32.mrb[6].mxu0  ;;  %v289_v52 = vpop.f32.mrb[6].mxu1 }
 0x10a   :  { %v372_v53 = vmul.f32 -1.442695, %v246_v46  ;;  %v374_v54 = vmul.f32 -1.442695, %v287_v47  ;;  %v250_v55 = vpop.f32.mrb[7].mxu0  ;;  %v382_v56 = vpop.f32.mrb[7].mxu1 }
 0x10b   :  { %v373_v57 = vmul.f32 -1.442695, %v248_v50 }
 0x10c   :  { %409 = vpow2.f32 %v372_v53 }
 0x10d   :  { %411 = vpow2.f32 %v374_v54 }
 0x10e   :  { %v402_v58 = vpop.eup %401  ;;  %413 = vpow2.f32 %v373_v57 }
 0x10f   :  { %v404_v59 = vpop.eup %403  ;;  %v313_v60 = vadd.f32 1.0, %v402_v58 }
 0x110   :  { %v406_v61 = vpop.eup %405  ;;  %v315_v62 = vadd.f32 1.0, %v404_v59 }
 0x111   :  { %v408_v63 = vpop.eup %407  ;;  %415 = vrcp.f32 %v313_v60  ;;  %v314_v0 = vadd.f32 1.0, %v406_v61 }
 0x112   :  { %417 = vrcp.f32 %v315_v62  ;;  %v316_v1 = vadd.f32 1.0, %v408_v63 }
 0x113   :  { %419 = vrcp.f32 %v314_v0 }
 0x114   :  { %421 = vrcp.f32 %v316_v1 }
 0x116   :  { %v410_v2 = vpop.eup %409 }
 0x117   :  { %v412_v3 = vpop.eup %411  ;;  %v317_v4 = vadd.f32 1.0, %v410_v2 }
 0x118   :  { %v414_v5 = vpop.eup %413  ;;  %v319_v6 = vadd.f32 1.0, %v412_v3 }
 0x119   :  { %423 = vrcp.f32 %v317_v4  ;;  %v318_v7 = vadd.f32 1.0, %v414_v5 }
 0x11a   :  { %425 = vrcp.f32 %v319_v6 }
 0x11b   :  { %v416_v8 = vpop.eup %415  ;;  %427 = vrcp.f32 %v318_v7 }
 0x11c   :  { %v418_v9 = vpop.eup %417  ;;  %334 = vst [vmem:[#allocation7] sm:$0xff] %v416_v8 }
 0x11d   :  { %v420_v10 = vpop.eup %419  ;;  %336 = vst [vmem:[#allocation7 + $0x10] sm:$0xff] %v418_v9 }
 0x11e   :  { %v422_v11 = vpop.eup %421  ;;  %335 = vst [vmem:[#allocation7 + $0x8] sm:$0xff] %v420_v10 }
 0x11f   :  { %337 = vst [vmem:[#allocation7 + $0x18] sm:$0xff] %v422_v11 }
 0x123   :  { %v424_v12 = vpop.eup %423 }
 0x124   :  { %v426_v13 = vpop.eup %425  ;;  %338 = vst [vmem:[#allocation7 + $0x20] sm:$0xff] %v424_v12 }
 0x125   :  { %v428_v14 = vpop.eup %427  ;;  %340 = vst [vmem:[#allocation7 + $0x30] sm:$0xff] %v426_v13 }
 0x126   :  { %339 = vst [vmem:[#allocation7 + $0x28] sm:$0xff] %v428_v14 }
 0x127   :  { %484 = shalt.err (!%p481_p6)
}
 0x128   :  { %s485_s15 = scalar_lea.hbm %s582_s3, 896 }
 0x129   :  { %p486_p7 = scmp.ne.s32.totalorder %s582_s3, %s485_s15  ;;  %p489_p8 = scmp.lt.u32.totalorder %s485_s15, %s582_s3 }
 0x12b   :  { %p491_p9 = pnand %p489_p8, %p486_p7 }
 0x12d   :  { %494 = shalt.err (!%p491_p9)
}
 0x12e   :  { %350 = dma.vmem_to_hbm [thread:$0]  %s348_s11, 896, %s582_s3, [#allocation4]  }
 0x12f   :  { %499 = dma.done.wait [#allocation4], 896  }
 0x130   :  { %500 = vsyncadd [#allocation4], 4294966400 }
 0x131   :  { %354 = vsyncpa [#allocation3], 1 }
 0x132   :  { %355 = vsyncpa [#allocation6], 1 }
 0x133   :  { %356 = vsyncpa [#allocation4], 1 }

</bundles_post_ra>
